<compile_context>
chip_gen: v7x
topology: tpu7x:2x2x1
jax: 0.10.0
libtpu: 0.0.40
codegen_flags: <defaults>
</compile_context>

<pallas_src>
import jax
import jax.numpy as jnp
from jax.experimental import pallas as pl
from jax.experimental.pallas import tpu as pltpu


def _round_up(n, m):
    return (n + m - 1) // m * m


def _cdiv(a, b):
    return -(-a // b)


def actor_kernel(x_ref, w1_ref, b1_ref, w2_ref, b2_ref, w3_ref, b3_ref,
                 aff_ref, o_ref):
    # Layer 1: Linear(obs_dim, 256) + ReLU   (bf16 MXU inputs, f32 accumulation;
    # bf16 downcast fused into the ReLU so intermediates stay half-width).
    x = x_ref[...].astype(jnp.bfloat16)
    h1 = jnp.dot(x, w1_ref[...], preferred_element_type=jnp.float32)
    h1 = jnp.maximum(h1 + b1_ref[...], 0.0).astype(jnp.bfloat16)
    # Layer 2: Linear(256, 256) + ReLU
    h2 = jnp.dot(h1, w2_ref[...], preferred_element_type=jnp.float32)
    h2 = jnp.maximum(h2 + b2_ref[...], 0.0).astype(jnp.bfloat16)
    # Layer 3: Linear(256, act_dim_padded) + Tanh
    a = jnp.dot(h2, w3_ref[...], preferred_element_type=jnp.float32)
    a = jnp.tanh(a + b3_ref[...])
    # Post-tanh action rescale: row 0 of aff = scale, row 1 = bias.
    o_ref[...] = a * aff_ref[0:1, :] + aff_ref[1:2, :]


def _choose_batch_tiling(B, block_b):
    """Balanced ceil-split of B into equal multiple-of-8 tiles.

    Ensures >=2 grid steps once B >= 256 so the "parallel" batch axis can be
    sharded across v7x's two TensorCores (harmless extra ~0.35us step on
    single-TC v5e/v6e)."""
    min_steps = 2 if B >= 256 else 1
    n = max(_cdiv(B, block_b), min_steps)
    n = max(1, min(n, _cdiv(B, 8)))        # never shrink tiles below 8 rows
    TB = _round_up(_cdiv(B, n), 8)
    n = _cdiv(B, TB)
    return TB, n * TB


def actor_forward(x, params, act_dim, *, block_b=1024, return_padded=False):
    """x: [B, obs_dim] float32. params: dict from init_actor_params.
    Returns [B, act_dim] float32 actions (or the padded [Bp, act_p] slab if
    return_padded=True, letting the consumer slice lazily)."""
    B, obs_dim = x.shape
    H = params["w1"].shape[1]
    act_p = params["w3"].shape[1]          # lane-padded action dim (multiple of 128)

    TB, Bp = _choose_batch_tiling(B, block_b)
    if Bp != B:
        x = jnp.pad(x, ((0, Bp - B), (0, 0)))

    grid = (Bp // TB,)
    const = lambda i: (0, 0)               # weights/biases resident across steps

    # Advisory cost hint so XLA schedules neighbors around the custom call.
    flops = 2 * Bp * (obs_dim * H + H * H + H * act_p)
    bytes_accessed = (Bp * obs_dim * 4 + Bp * act_p * 4            # x + out
                      + (obs_dim * H + H * H + H * act_p) * 2      # bf16 weights
                      + (2 * H + 3 * act_p) * 4)                   # biases + affine
    cost = pl.CostEstimate(flops=flops,
                           transcendentals=Bp * act_p,
                           bytes_accessed=bytes_accessed)

    out = pl.pallas_call(
        actor_kernel,
        out_shape=jax.ShapeDtypeStruct((Bp, act_p), jnp.float32),
        grid=grid,
        in_specs=[
            pl.BlockSpec((TB, obs_dim), lambda i: (i, 0)),   # x, tiled over batch
            pl.BlockSpec((obs_dim, H), const),               # W1
            pl.BlockSpec((1, H), const),                     # b1
            pl.BlockSpec((H, H), const),                     # W2
            pl.BlockSpec((1, H), const),                     # b2
            pl.BlockSpec((H, act_p), const),                 # W3 (cols padded to 128)
            pl.BlockSpec((1, act_p), const),                 # b3
            pl.BlockSpec((2, act_p), const),                 # [scale; bias]
        ],
        out_specs=pl.BlockSpec((TB, act_p), lambda i: (i, 0)),
        compiler_params=pltpu.CompilerParams(
            dimension_semantics=("parallel",),
            vmem_limit_bytes=32 * 1024 * 1024),
        cost_estimate=cost,
    )(x, params["w1"], params["b1"], params["w2"], params["b2"],
      params["w3"], params["b3"], params["affine"])

    if return_padded:
        return out
    return out[:B, :act_dim]


def init_actor_params(key, obs_dim, act_dim, hidden=256,
                      action_high=1.0, action_low=-1.0):
    """Init mimicking PyTorch nn.Linear default (U[-1/sqrt(fan_in), +1/sqrt(fan_in)]).

    Weights stored as bf16 [in_features, out_features]; biases f32.
    W3 / b3 / scale / bias are zero-padded along the action dim to a multiple of 128
    for lane-dense output stores."""
    act_p = _round_up(act_dim, 128)

    def linear(k, fan_in, fan_out):
        kw, kb = jax.random.split(k)
        bound = 1.0 / jnp.sqrt(fan_in)
        w = jax.random.uniform(kw, (fan_in, fan_out), jnp.float32, -bound, bound)
        b = jax.random.uniform(kb, (1, fan_out), jnp.float32, -bound, bound)
        return w, b

    k1, k2, k3 = jax.random.split(key, 3)
    w1, b1 = linear(k1, obs_dim, hidden)
    w2, b2 = linear(k2, hidden, hidden)
    w3, b3 = linear(k3, hidden, act_dim)

    # Pad action dimension to act_p lanes.
    w3 = jnp.pad(w3, ((0, 0), (0, act_p - act_dim)))
    b3 = jnp.pad(b3, ((0, 0), (0, act_p - act_dim)))
    scale = jnp.pad(jnp.full((1, act_dim), (action_high - action_low) / 2.0,
                             jnp.float32), ((0, 0), (0, act_p - act_dim)))
    bias = jnp.pad(jnp.full((1, act_dim), (action_high + action_low) / 2.0,
                            jnp.float32), ((0, 0), (0, act_p - act_dim)))
    affine = jnp.concatenate([scale, bias], axis=0)      # [2, act_p]

    return {"w1": w1.astype(jnp.bfloat16), "b1": b1,
            "w2": w2.astype(jnp.bfloat16), "b2": b2,
            "w3": w3.astype(jnp.bfloat16), "b3": b3,
            "affine": affine}


def ref_forward(x, params, act_dim):
    """Pure-JAX reference with matched precision (bf16-rounded matmul inputs,
    f32 accumulation) for a tight correctness check."""
    bf = lambda t: t.astype(jnp.bfloat16).astype(jnp.float32)
    w1 = params["w1"].astype(jnp.float32)
    w2 = params["w2"].astype(jnp.float32)
    w3 = params["w3"].astype(jnp.float32)
    h1 = jnp.maximum(bf(x) @ w1 + params["b1"], 0.0)
    h2 = jnp.maximum(bf(h1) @ w2 + params["b2"], 0.0)
    a = jnp.tanh(bf(h2) @ w3 + params["b3"])
    out = a * params["affine"][0:1] + params["affine"][1:2]
    return out[:, :act_dim]


# TODO(synk): the optional QAT / fake-quant path (QuantStub, FakeQuantize observers)
# of the PyTorch module is not implemented; only the default float forward is.

if __name__ == "__main__":
    key = jax.random.PRNGKey(0)
    kx, kp, kx2 = jax.random.split(key, 3)

    obs_dim = 16   # env.observation_space.shape[0]
    act_dim = 8    # env.action_space.shape[0]

    params = init_actor_params(kp, obs_dim, act_dim,
                               action_high=2.0, action_low=-2.0)

    # Small "acting" batch (single grid step, batch padded 2 -> 8).
    x_small = jax.random.normal(kx, (2, obs_dim), jnp.float32)
    out_small = jax.block_until_ready(actor_forward(x_small, params, act_dim))
    assert out_small.shape == (2, act_dim)
    exp_small = ref_forward(x_small, params, act_dim)
    assert jnp.allclose(out_small, exp_small, atol=1e-4, rtol=1e-4)

    # Larger "training" batch (>=2 grid steps, balanced tiles: 300 -> 2 x 152).
    x_big = jax.random.normal(kx2, (300, obs_dim), jnp.float32)
    out_big = jax.block_until_ready(actor_forward(x_big, params, act_dim))
    assert out_big.shape == (300, act_dim)
    exp_big = ref_forward(x_big, params, act_dim)
    assert jnp.allclose(out_big, exp_big, atol=1e-4, rtol=1e-4)

    # Actions must lie within [action_low, action_high] = [-2, 2].
    assert jnp.all(jnp.abs(out_big) <= 2.0 + 1e-5)

    print("KERNEL_OK")
</pallas_src>

<mosaic_0001>
module attributes {stable_mosaic.version = 11 : i64} {
  func.func @actor_kernel(%arg0: i32, %arg1: memref<8x16xf32, #tpu.memory_space<vmem>>, %arg2: memref<16x256xbf16, #tpu.memory_space<vmem>>, %arg3: memref<1x256xf32, #tpu.memory_space<vmem>>, %arg4: memref<256x256xbf16, #tpu.memory_space<vmem>>, %arg5: memref<1x256xf32, #tpu.memory_space<vmem>>, %arg6: memref<256x128xbf16, #tpu.memory_space<vmem>>, %arg7: memref<1x128xf32, #tpu.memory_space<vmem>>, %arg8: memref<2x128xf32, #tpu.memory_space<vmem>>, %arg9: memref<8x128xf32, #tpu.memory_space<vmem>>) attributes {dimension_semantics = [#tpu.dimension_semantics<parallel>], iteration_bounds = array<i64: 1>, scalar_prefetch = 0 : i64, scratch_operands = 0 : i64, tpu.core_type = #tpu.core_type<tc>, window_params = [{transform_indices = @transform_0, window_bounds = array<i64: 8, 16>}, {pipeline_mode = #tpu.pipeline_mode<synchronous>, transform_indices = @transform_1, window_bounds = array<i64: 16, 256>}, {pipeline_mode = #tpu.pipeline_mode<synchronous>, transform_indices = @transform_2, window_bounds = array<i64: 1, 256>}, {pipeline_mode = #tpu.pipeline_mode<synchronous>, transform_indices = @transform_3, window_bounds = array<i64: 256, 256>}, {pipeline_mode = #tpu.pipeline_mode<synchronous>, transform_indices = @transform_4, window_bounds = array<i64: 1, 256>}, {pipeline_mode = #tpu.pipeline_mode<synchronous>, transform_indices = @transform_5, window_bounds = array<i64: 256, 128>}, {pipeline_mode = #tpu.pipeline_mode<synchronous>, transform_indices = @transform_6, window_bounds = array<i64: 1, 128>}, {pipeline_mode = #tpu.pipeline_mode<synchronous>, transform_indices = @transform_7, window_bounds = array<i64: 2, 128>}, {transform_indices = @transform_8, window_bounds = array<i64: 8, 128>}]} {
    %c0 = arith.constant 0 : index
    %c0_0 = arith.constant 0 : index
    %0 = vector.load %arg1[%c0, %c0_0] : memref<8x16xf32, #tpu.memory_space<vmem>>, vector<8x16xf32>
    %1 = arith.truncf %0 : vector<8x16xf32> to vector<8x16xbf16>
    %c0_1 = arith.constant 0 : index
    %c0_2 = arith.constant 0 : index
    %2 = vector.load %arg2[%c0_1, %c0_2] : memref<16x256xbf16, #tpu.memory_space<vmem>>, vector<16x256xbf16>
    %cst = arith.constant dense<0.000000e+00> : vector<8x256xf32>
    %3 = tpu.matmul %1, %2, %cst {dimension_numbers = #tpu.dot_dimension_numbers<[1], [0], [0], [1], [0, 0, 1, 1], [], []>} : vector<8x16xbf16>, vector<16x256xbf16>, vector<8x256xf32> -> vector<8x256xf32>
    %c0_3 = arith.constant 0 : index
    %c0_4 = arith.constant 0 : index
    %4 = vector.load %arg3[%c0_3, %c0_4] : memref<1x256xf32, #tpu.memory_space<vmem>>, vector<1x256xf32>
    %5 = vector.broadcast %4 : vector<1x256xf32> to vector<8x256xf32>
    %6 = arith.addf %3, %5 : vector<8x256xf32>
    %cst_5 = arith.constant 0.000000e+00 : f32
    %7 = vector.broadcast %cst_5 : f32 to vector<8x256xf32>
    %8 = arith.maximumf %6, %7 : vector<8x256xf32>
    %9 = arith.truncf %8 : vector<8x256xf32> to vector<8x256xbf16>
    %c0_6 = arith.constant 0 : index
    %c0_7 = arith.constant 0 : index
    %10 = vector.load %arg4[%c0_6, %c0_7] : memref<256x256xbf16, #tpu.memory_space<vmem>>, vector<256x256xbf16>
    %cst_8 = arith.constant dense<0.000000e+00> : vector<8x256xf32>
    %11 = tpu.matmul %9, %10, %cst_8 {dimension_numbers = #tpu.dot_dimension_numbers<[1], [0], [0], [1], [0, 0, 1, 1], [], []>} : vector<8x256xbf16>, vector<256x256xbf16>, vector<8x256xf32> -> vector<8x256xf32>
    %c0_9 = arith.constant 0 : index
    %c0_10 = arith.constant 0 : index
    %12 = vector.load %arg5[%c0_9, %c0_10] : memref<1x256xf32, #tpu.memory_space<vmem>>, vector<1x256xf32>
    %13 = vector.broadcast %12 : vector<1x256xf32> to vector<8x256xf32>
    %14 = arith.addf %11, %13 : vector<8x256xf32>
    %cst_11 = arith.constant 0.000000e+00 : f32
    %15 = vector.broadcast %cst_11 : f32 to vector<8x256xf32>
    %16 = arith.maximumf %14, %15 : vector<8x256xf32>
    %17 = arith.truncf %16 : vector<8x256xf32> to vector<8x256xbf16>
    %c0_12 = arith.constant 0 : index
    %c0_13 = arith.constant 0 : index
    %18 = vector.load %arg6[%c0_12, %c0_13] : memref<256x128xbf16, #tpu.memory_space<vmem>>, vector<256x128xbf16>
    %cst_14 = arith.constant dense<0.000000e+00> : vector<8x128xf32>
    %19 = tpu.matmul %17, %18, %cst_14 {dimension_numbers = #tpu.dot_dimension_numbers<[1], [0], [0], [1], [0, 0, 1, 1], [], []>} : vector<8x256xbf16>, vector<256x128xbf16>, vector<8x128xf32> -> vector<8x128xf32>
    %c0_15 = arith.constant 0 : index
    %c0_16 = arith.constant 0 : index
    %20 = vector.load %arg7[%c0_15, %c0_16] : memref<1x128xf32, #tpu.memory_space<vmem>>, vector<1x128xf32>
    %21 = vector.broadcast %20 : vector<1x128xf32> to vector<8x128xf32>
    %22 = arith.addf %19, %21 : vector<8x128xf32>
    %23 = math.tanh %22 : vector<8x128xf32>
    %c0_17 = arith.constant 0 : index
    %c0_18 = arith.constant 0 : index
    %24 = vector.load %arg8[%c0_17, %c0_18] : memref<2x128xf32, #tpu.memory_space<vmem>>, vector<1x128xf32>
    %25 = vector.broadcast %24 : vector<1x128xf32> to vector<8x128xf32>
    %26 = arith.mulf %23, %25 : vector<8x128xf32>
    %c1 = arith.constant 1 : index
    %c0_19 = arith.constant 0 : index
    %27 = vector.load %arg8[%c1, %c0_19] : memref<2x128xf32, #tpu.memory_space<vmem>>, vector<1x128xf32>
    %28 = vector.broadcast %27 : vector<1x128xf32> to vector<8x128xf32>
    %29 = arith.addf %26, %28 : vector<8x128xf32>
    %c0_20 = arith.constant 0 : index
    %c0_21 = arith.constant 0 : index
    %30 = vector.load %arg9[%c0_20, %c0_21] : memref<8x128xf32, #tpu.memory_space<vmem>>, vector<8x128xf32>
    tpu.vector_store %arg9[%c0_20, %c0_21], %29 {strides = array<i32>} : memref<8x128xf32, #tpu.memory_space<vmem>>, vector<8x128xf32>,
    return
  }
  func.func @transform_0(%arg0: i32) -> (i32, i32) {
    %c0_i32 = arith.constant 0 : i32
    %c0_i32_0 = arith.constant 0 : i32
    return %arg0, %c0_i32 : i32, i32
  }
  func.func @transform_1(%arg0: i32) -> (i32, i32) {
    %c0_i32 = arith.constant 0 : i32
    %c0_i32_0 = arith.constant 0 : i32
    %c0_i32_1 = arith.constant 0 : i32
    return %c0_i32, %c0_i32_0 : i32, i32
  }
  func.func @transform_2(%arg0: i32) -> (i32, i32) {
    %c0_i32 = arith.constant 0 : i32
    %c0_i32_0 = arith.constant 0 : i32
    %c0_i32_1 = arith.constant 0 : i32
    return %c0_i32, %c0_i32_0 : i32, i32
  }
  func.func @transform_3(%arg0: i32) -> (i32, i32) {
    %c0_i32 = arith.constant 0 : i32
    %c0_i32_0 = arith.constant 0 : i32
    %c0_i32_1 = arith.constant 0 : i32
    return %c0_i32, %c0_i32_0 : i32, i32
  }
  func.func @transform_4(%arg0: i32) -> (i32, i32) {
    %c0_i32 = arith.constant 0 : i32
    %c0_i32_0 = arith.constant 0 : i32
    %c0_i32_1 = arith.constant 0 : i32
    return %c0_i32, %c0_i32_0 : i32, i32
  }
  func.func @transform_5(%arg0: i32) -> (i32, i32) {
    %c0_i32 = arith.constant 0 : i32
    %c0_i32_0 = arith.constant 0 : i32
    %c0_i32_1 = arith.constant 0 : i32
    return %c0_i32, %c0_i32_0 : i32, i32
  }
  func.func @transform_6(%arg0: i32) -> (i32, i32) {
    %c0_i32 = arith.constant 0 : i32
    %c0_i32_0 = arith.constant 0 : i32
    %c0_i32_1 = arith.constant 0 : i32
    return %c0_i32, %c0_i32_0 : i32, i32
  }
  func.func @transform_7(%arg0: i32) -> (i32, i32) {
    %c0_i32 = arith.constant 0 : i32
    %c0_i32_0 = arith.constant 0 : i32
    %c0_i32_1 = arith.constant 0 : i32
    return %c0_i32, %c0_i32_0 : i32, i32
  }
  func.func @transform_8(%arg0: i32) -> (i32, i32) {
    %c0_i32 = arith.constant 0 : i32
    %c0_i32_0 = arith.constant 0 : i32
    return %arg0, %c0_i32 : i32, i32
  }
}

</mosaic_0001>

<bundles_post_ra>
// kernel: tpu_custom_call.1
= control target key start
LH: loop header
LB: loop body
LE: loop exit
PB: predicated region body
PF: predicated region fallthrough
CT: control target
= control target key end

     0   :  { %13 = vsyncpa [#allocation3], 0  ;;  %s1023_s0 = inlined_call_operand.hbm [shape: f32[8,16], index: 0, kind: input, shape index: {}]   ;;  %s1024_s1 = inlined_call_operand.hbm [shape: bf16[16,256], index: 1, kind: input, shape index: {}]   ;;  %s1025_s2 = inlined_call_operand.vmem [shape: f32[1,256], index: 2, kind: input, shape index: {}]   ;;  %s1026_s3 = inlined_call_operand.hbm [shape: bf16[256,256], index: 3, kind: input, shape index: {}]   ;;  %s1027_s4 = inlined_call_operand.vmem [shape: f32[1,256], index: 4, kind: input, shape index: {}]   ;;  %s1028_s5 = inlined_call_operand.hbm [shape: bf16[256,128], index: 5, kind: input, shape index: {}]   ;;  %s1029_s6 = inlined_call_operand.vmem [shape: f32[1,128], index: 6, kind: input, shape index: {}]   ;;  %s1030_s7 = inlined_call_operand.vmem [shape: f32[2,128], index: 7, kind: input, shape index: {}]   ;;  %s1031_s8 = inlined_call_operand.hbm [shape: f32[8,128], index: 8, kind: output, shape index: {}]  }
   0x1   :  { %14 = vsyncpa [#allocation6], 0 }
   0x2   :  { %15 = vsyncpa [#allocation9], 0 }
   0x3   :  { %16 = vsyncpa [#allocation4], 0  ;;  %s887_s27 = smov [#allocation5]   ;;  %s769_s9 = scalar_lea.hbm %s1024_s1, 256 }
   0x4   :  { %s32_s28 = sshll.u32 %s887_s27, 4  ;;  %p770_p0 = scmp.ne.s32.totalorder %s1024_s1, %s769_s9  ;;  %s33_s28 = int_to_ptr.vmem [resolvable:$true] %s32_s28 }
   0x5   :  { %p773_p1 = scmp.lt.u32.totalorder %s769_s9, %s1024_s1 }
   0x7   :  { %p775_p2 = pnand %p773_p1, %p770_p0 }
   0x9   :  { %778 = shalt.err (!%p775_p2)
}
   0xa   :  { %s779_s14 = scalar_lea.vmem %s33_s28, 256  ;;  %p784_p4 = scmp.lt.s32.totalorder %s33_s28, %s33_s28 }
   0xb   :  { %p780_p3 = scmp.ne.s32.totalorder %s33_s28, %s779_s14  ;;  %p785_p5 = scmp.lt.s32.totalorder %s779_s14, %s779_s14 }
   0xd   :  { %p786_p6 = por %p785_p5, %p784_p4 }
   0xf   :  { %p787_p7 = pnand %p786_p6, %p780_p3 }
  0x11   :  { %790 = shalt.err (!%p787_p7)
}
  0x12   :  { %s888_s15 = smov 128   ;;  %s889_s16 = smov 8  }
  0x13   :  { %38 = dma.hbm_to_vmem [thread:$0]  %s1024_s1, 256, %s33_s28, [#allocation6], %s888_s15, %s888_s15, %s889_s16  }
  0x14   :  { %s890_s19 = smov [#allocation2]   ;;  %s891_s21 = smov [#allocation7]  }
  0x15   :  { %s23_s20 = sshll.u32 %s890_s19, 4  ;;  %s46_s22 = sshll.u32 %s891_s21, 4  ;;  %s24_s20 = int_to_ptr.vmem [resolvable:$true] %s23_s20  ;;  %s47_s22 = int_to_ptr.vmem [resolvable:$true] %s46_s22 }
  0x16   :  { %s791_s25 = scalar_lea.hbm %s1023_s0, 128 }
  0x17   :  { %p792_p8 = scmp.ne.s32.totalorder %s1023_s0, %s791_s25  ;;  %p795_p9 = scmp.lt.u32.totalorder %s791_s25, %s1023_s0 }
  0x19   :  { %p797_p10 = pnand %p795_p9, %p792_p8 }
  0x1b   :  { %800 = shalt.err (!%p797_p10)
}
  0x1c   :  { %s801_s1 = scalar_lea.vmem %s24_s20, 128  ;;  %p806_p12 = scmp.lt.s32.totalorder %s24_s20, %s24_s20 }
  0x1d   :  { %p802_p11 = scmp.ne.s32.totalorder %s24_s20, %s801_s1  ;;  %p807_p13 = scmp.lt.s32.totalorder %s801_s1, %s801_s1 }
  0x1f   :  { %p808_p0 = por %p807_p13, %p806_p12 }
  0x21   :  { %p809_p1 = pnand %p808_p0, %p802_p11 }
  0x23   :  { %812 = shalt.err (!%p809_p1)
}
  0x24   :  { %26 = dma.hbm_to_vmem [thread:$0]  %s1023_s0, 128, %s24_s20, [#allocation3]  }
  0x25   :  { %s813_s12 = scalar_lea.hbm %s1026_s3, 4096 }
  0x26   :  { %p814_p2 = scmp.ne.s32.totalorder %s1026_s3, %s813_s12  ;;  %p817_p3 = scmp.lt.u32.totalorder %s813_s12, %s1026_s3 }
  0x28   :  { %p819_p4 = pnand %p817_p3, %p814_p2 }
  0x2a   :  { %822 = shalt.err (!%p819_p4)
}
  0x2b   :  { %s823_s19 = scalar_lea.vmem %s47_s22, 4096  ;;  %p828_p6 = scmp.lt.s32.totalorder %s47_s22, %s47_s22 }
  0x2c   :  { %p824_p5 = scmp.ne.s32.totalorder %s47_s22, %s823_s19  ;;  %p829_p7 = scmp.lt.s32.totalorder %s823_s19, %s823_s19 }
  0x2e   :  { %p830_p8 = por %p829_p7, %p828_p6 }
  0x30   :  { %p831_p9 = pnand %p830_p8, %p824_p5 }
  0x32   :  { %834 = shalt.err (!%p831_p9)
}
  0x33   :  { %52 = dma.hbm_to_vmem [thread:$0]  %s1026_s3, 4096, %s47_s22, [#allocation6], %s888_s15, %s888_s15, %s889_s16  }
  0x34   :  { %s892_s21 = smov [#allocation8]   ;;  %s835_s26 = scalar_lea.hbm %s1028_s5, 2048 }
  0x35   :  { %s60_s23 = sshll.u32 %s892_s21, 4  ;;  %p836_p10 = scmp.ne.s32.totalorder %s1028_s5, %s835_s26  ;;  %s61_s23 = int_to_ptr.vmem [resolvable:$true] %s60_s23 }
  0x36   :  { %p839_p11 = scmp.lt.u32.totalorder %s835_s26, %s1028_s5 }
  0x38   :  { %p841_p12 = pnand %p839_p11, %p836_p10 }
  0x3a   :  { %844 = shalt.err (!%p841_p12)
}
  0x3b   :  { %s845_s28 = scalar_lea.vmem %s61_s23, 2048  ;;  %p850_p0 = scmp.lt.s32.totalorder %s61_s23, %s61_s23 }
  0x3c   :  { %p846_p13 = scmp.ne.s32.totalorder %s61_s23, %s845_s28  ;;  %p851_p1 = scmp.lt.s32.totalorder %s845_s28, %s845_s28 }
  0x3e   :  { %p852_p2 = por %p851_p1, %p850_p0 }
  0x40   :  { %p853_p3 = pnand %p852_p2, %p846_p13 }
  0x42   :  { %856 = shalt.err (!%p853_p3)
}
  0x43   :  { %s893_s3 = smov 64   ;;  %s894_s15 = smov 4  }
  0x44   :  { %66 = dma.hbm_to_vmem [thread:$0]  %s1028_s5, 2048, %s61_s23, [#allocation9], %s893_s3, %s893_s3, %s894_s15  }
  0x45   :  { %879 = dma.done.wait [#allocation3], 128  }
  0x46   :  { %880 = vsyncadd [#allocation3], 4294967168 }
  0x47   :  { %881 = dma.done.wait [#allocation6], 4352  }
  0x48   :  { %882 = vsyncadd [#allocation6], 4294962944 }
  0x49   :  { %883 = dma.done.wait [#allocation9], 2048  }
  0x4a   :  { %884 = vsyncadd [#allocation9], 4294965248  ;;  %v895_v0 = vmov 0   ;;  %v700_v1 = vld [vmem:[#allocation5 + $0x4] ss:$8 sps:$4 sm:$0xff]   ;;  %v84_v3 = vld [vmem:[#allocation2] sm:$0xff]  ;;  %v90_v49 = vlaneseq }
  0x4b   :  { %146 = vmatprep.mubr.bf16.mxu0 %v895_v0  ;;  %v702_v2 = vld [vmem:[#allocation5] ss:$8 sps:$4 sm:$0xff]   ;;  %114 = vmatprep.subr.bf16.mxu0 %v700_v1  ;;  %v85_v4 = vpack.c.bf16 %v84_v3, %v84_v3  ;;  %v703_v5 = vld [vmem:[#allocation7 + $0x4] ss:$8 sps:$4 sm:$0xff]   ;;  %v705_v6 = vld [vmem:[#allocation7] ss:$8 sps:$4 sm:$0xff]  }
  0x4c   :  { %115 = vmatpush1.bf16.msra.mxu0 %v702_v2  ;;  %vm110_vm0 = vcmask 130048   ;;  %v706_v7 = vld [vmem:[#allocation7 + $0x14] ss:$8 sps:$4 sm:$0xff]   ;;  %363 = vmatprep.subr.bf16.mxu1 %v703_v5  ;;  %v708_v8 = vld [vmem:[#allocation7 + $0x10] ss:$8 sps:$4 sm:$0xff]   ;;  %v751_v37 = vld [vmem:[#allocation8 + $0x40] sm:$0xff]  }
  0x4d   :  { %364 = vmatpush1.bf16.msra.mxu1 %v705_v6  ;;  %v709_v9 = vld [vmem:[#allocation7 + $0x24] ss:$8 sps:$4 sm:$0xff]   ;;  %v711_v10 = vld [vmem:[#allocation7 + $0x20] ss:$8 sps:$4 sm:$0xff]   ;;  %v712_v11 = vld [vmem:[#allocation7 + $0x34] ss:$8 sps:$4 sm:$0xff]   ;;  %668 = vmatprep.subr.bf16.mxu0 %v751_v37 }
  0x4e   :  { %365 = vmatprep.subr.bf16.mxu1 %v706_v7  ;;  %v714_v12 = vld [vmem:[#allocation7 + $0x30] ss:$8 sps:$4 sm:$0xff]   ;;  %v715_v13 = vld [vmem:[#allocation7 + $0x44] ss:$8 sps:$4 sm:$0xff]   ;;  %v717_v14 = vld [vmem:[#allocation7 + $0x40] ss:$8 sps:$4 sm:$0xff]  }
  0x4f   :  { %616 = vmatmul.mubr.msk.bf16.vlgmr.msra.gmra.mrb[0].mxu0 %vm110_vm0, %v85_v4  ;;  %v718_v15 = vld [vmem:[#allocation7 + $0x54] ss:$8 sps:$4 sm:$0xff]   ;;  %v720_v16 = vld [vmem:[#allocation7 + $0x50] ss:$8 sps:$4 sm:$0xff]   ;;  %v721_v17 = vld [vmem:[#allocation7 + $0x64] ss:$8 sps:$4 sm:$0xff]  }
  0x50   :  { %v723_v18 = vld [vmem:[#allocation7 + $0x60] ss:$8 sps:$4 sm:$0xff]   ;;  %v724_v19 = vld [vmem:[#allocation7 + $0x74] ss:$8 sps:$4 sm:$0xff]   ;;  %v726_v20 = vld [vmem:[#allocation7 + $0x70] ss:$8 sps:$4 sm:$0xff]  }
  0x51   :  { %366 = vmatpush1.bf16.msra.mxu1 %v708_v8  ;;  %v727_v21 = vld [vmem:[#allocation7 + $0x84] ss:$8 sps:$4 sm:$0xff]   ;;  %v729_v22 = vld [vmem:[#allocation7 + $0x80] ss:$8 sps:$4 sm:$0xff]   ;;  %v730_v23 = vld [vmem:[#allocation7 + $0x94] ss:$8 sps:$4 sm:$0xff]  }
  0x52   :  { %367 = vmatprep.subr.bf16.mxu1 %v709_v9  ;;  %v732_v24 = vld [vmem:[#allocation7 + $0x90] ss:$8 sps:$4 sm:$0xff]   ;;  %v733_v25 = vld [vmem:[#allocation7 + $0xa4] ss:$8 sps:$4 sm:$0xff]   ;;  %v735_v26 = vld [vmem:[#allocation7 + $0xa0] ss:$8 sps:$4 sm:$0xff]  }
  0x53   :  { %v736_v27 = vld [vmem:[#allocation7 + $0xb4] ss:$8 sps:$4 sm:$0xff]   ;;  %v738_v28 = vld [vmem:[#allocation7 + $0xb0] ss:$8 sps:$4 sm:$0xff]   ;;  %v739_v29 = vld [vmem:[#allocation7 + $0xc4] ss:$8 sps:$4 sm:$0xff]  }
  0x54   :  { %v741_v30 = vld [vmem:[#allocation7 + $0xc0] ss:$8 sps:$4 sm:$0xff]   ;;  %v742_v31 = vld [vmem:[#allocation7 + $0xd4] ss:$8 sps:$4 sm:$0xff]   ;;  %v744_v32 = vld [vmem:[#allocation7 + $0xd0] ss:$8 sps:$4 sm:$0xff]  }
  0x55   :  { %368 = vmatpush1.bf16.msra.mxu1 %v711_v10  ;;  %v745_v33 = vld [vmem:[#allocation7 + $0xe4] ss:$8 sps:$4 sm:$0xff]   ;;  %v747_v34 = vld [vmem:[#allocation7 + $0xe0] ss:$8 sps:$4 sm:$0xff]   ;;  %v748_v35 = vld [vmem:[#allocation7 + $0xf4] ss:$8 sps:$4 sm:$0xff]  }
  0x56   :  { %369 = vmatprep.subr.bf16.mxu1 %v712_v11  ;;  %v750_v36 = vld [vmem:[#allocation7 + $0xf0] ss:$8 sps:$4 sm:$0xff]   ;;  %v752_v38 = vld [vmem:[#allocation8] sm:$0xff]   ;;  %v753_v39 = vld [vmem:[#allocation8 + $0x48] sm:$0xff]   ;;  %v91_v50 = vshrl.u32 %v90_v49, 7  ;;  %s896_s18 = smov [#allocation10]  }
  0x57   :  { %669 = vmatpush3.bf16.msra.mxu0 %v752_v38  ;;  %v754_v40 = vld [vmem:[#allocation8 + $0x8] sm:$0xff]   ;;  %v755_v41 = vld [vmem:[#allocation8 + $0x50] sm:$0xff]   ;;  %v757_v43 = vld [vmem:[#allocation8 + $0x58] sm:$0xff]   ;;  %s603_s19 = sshll.u32 %s896_s18, 4  ;;  %s604_s19 = int_to_ptr.vmem [resolvable:$true] %s603_s19 }
  0x58   :  { %670 = vmatprep.subr.bf16.mxu0 %v753_v39  ;;  %v756_v42 = vld [vmem:[#allocation8 + $0x10] sm:$0xff]   ;;  %v758_v44 = vld [vmem:[#allocation8 + $0x18] sm:$0xff]   ;;  %v759_v45 = vld [vmem:[#allocation8 + $0x60] sm:$0xff]   ;;  %v92_v51 = vsub.s32 0, %v91_v50  ;;  %v96_v53 = vsub.s32 1, %v91_v50  ;;  %p862_p5 = scmp.lt.s32.totalorder %s604_s19, %s604_s19 }
  0x59   :  { %370 = vmatpush1.bf16.msra.mxu1 %v714_v12  ;;  %v760_v46 = vld [vmem:[#allocation8 + $0x20] sm:$0xff]   ;;  %v761_v47 = vld [vmem:[#allocation8 + $0x68] sm:$0xff]   ;;  %v763_v2 = vld [vmem:[#allocation8 + $0x70] sm:$0xff]  }
  0x5a   :  { %371 = vmatprep.subr.bf16.mxu1 %v715_v13  ;;  %v762_v48 = vld [vmem:[#allocation8 + $0x28] sm:$0xff]   ;;  %v764_v3 = vld [vmem:[#allocation8 + $0x30] sm:$0xff]   ;;  %v765_v4 = vld [vmem:[#allocation8 + $0x78] sm:$0xff]  }
  0x5b   :  { %671 = vmatpush3.bf16.msra.mxu0 %v754_v40  ;;  %v88_v52 = vld [vmem:[%s1025_s2] sm:$0x3]  ;;  %v766_v5 = vld [vmem:[#allocation8 + $0x38] sm:$0xff]  }
  0x5c   :  { %672 = vmatprep.subr.bf16.mxu0 %v755_v41  ;;  %v93_v54 = vrot.slane %v88_v52, %v92_v51  ;;  %v97_v55 = vrot.slane %v88_v52, %v96_v53  ;;  %v191_v6 = vld [vmem:[%s1027_s4] sm:$0x3] }
  0x5d   :  { %372 = vmatpush1.bf16.msra.mxu1 %v717_v14  ;;  %v196_v7 = vrot.slane %v191_v6, %v92_v51  ;;  %v200_v8 = vrot.slane %v191_v6, %v96_v53 }
  0x5e   :  { %373 = vmatprep.subr.bf16.mxu1 %v718_v15 }
  0x5f   :  { %673 = vmatpush3.bf16.msra.mxu0 %v756_v42 }
  0x60   :  { %674 = vmatprep.subr.bf16.mxu0 %v757_v43 }
  0x61   :  { %374 = vmatpush1.bf16.msra.mxu1 %v720_v16 }
  0x62   :  { %375 = vmatprep.subr.bf16.mxu1 %v721_v17 }
  0x63   :  { %675 = vmatpush3.bf16.msra.mxu0 %v758_v44 }
  0x64   :  { %676 = vmatprep.subr.bf16.mxu0 %v759_v45 }
  0x65   :  { %376 = vmatpush1.bf16.msra.mxu1 %v723_v18 }
  0x66   :  { %377 = vmatprep.subr.bf16.mxu1 %v724_v19 }
  0x67   :  { %677 = vmatpush3.bf16.msra.mxu0 %v760_v46 }
  0x68   :  { %678 = vmatprep.subr.bf16.mxu0 %v761_v47 }
  0x69   :  { %378 = vmatpush1.bf16.msra.mxu1 %v726_v20  ;;  %v649_v20 = vld [vmem:[%s1029_s6] ss:$0 sm:$0xff]  ;;  %s857_s6 = scalar_lea.vmem %s604_s19, 128 }
  0x6a   :  { %379 = vmatprep.subr.bf16.mxu1 %v727_v21  ;;  %p858_p4 = scmp.ne.s32.totalorder %s604_s19, %s857_s6  ;;  %p863_p6 = scmp.lt.s32.totalorder %s857_s6, %s857_s6 }
  0x6b   :  { %679 = vmatpush3.bf16.msra.mxu0 %v762_v48 }
  0x6c   :  { %680 = vmatprep.subr.bf16.mxu0 %v763_v2  ;;  %p864_p7 = por %p863_p6, %p862_p5 }
  0x6d   :  { %380 = vmatpush1.bf16.msra.mxu1 %v729_v22 }
  0x6e   :  { %381 = vmatprep.subr.bf16.mxu1 %v730_v23  ;;  %p865_p8 = pnand %p864_p7, %p858_p4 }
  0x6f   :  { %681 = vmatpush3.bf16.msra.mxu0 %v764_v3 }
  0x70   :  { %682 = vmatprep.subr.bf16.mxu0 %v765_v4 }
  0x71   :  { %382 = vmatpush1.bf16.msra.mxu1 %v732_v24 }
  0x72   :  { %383 = vmatprep.subr.bf16.mxu1 %v733_v25 }
  0x73   :  { %683 = vmatpush3.bf16.msra.mxu0 %v766_v5 }
  0x75   :  { %384 = vmatpush1.bf16.msra.mxu1 %v735_v26  ;;  %v666_v26 = vld [vmem:[%s1030_s7] ss:$0 sm:$0xff] }
  0x76   :  { %385 = vmatprep.subr.bf16.mxu1 %v736_v27 }
  0x79   :  { %386 = vmatpush1.bf16.msra.mxu1 %v738_v28  ;;  %v667_v28 = vld [vmem:[%s1030_s7 + $0x1] ss:$0 sm:$0xff] }
  0x7a   :  { %387 = vmatprep.subr.bf16.mxu1 %v739_v29 }
  0x7d   :  { %388 = vmatpush1.bf16.msra.mxu1 %v741_v30 }
  0x7e   :  { %389 = vmatprep.subr.bf16.mxu1 %v742_v31 }
  0x81   :  { %390 = vmatpush1.bf16.msra.mxu1 %v744_v32 }
  0x82   :  { %391 = vmatprep.subr.bf16.mxu1 %v745_v33 }
  0x85   :  { %392 = vmatpush1.bf16.msra.mxu1 %v747_v34 }
  0x86   :  { %393 = vmatprep.subr.bf16.mxu1 %v748_v35 }
  0x89   :  { %394 = vmatpush1.bf16.msra.mxu1 %v750_v36 }
 0x122   :  { %v148_v56 = vpop.f32.mrb[0].mxu0 }
 0x123   :  { %v149_v57 = vadd.f32 %v148_v56, %v93_v54  ;;  %v150_v58 = vpop.f32.mrb[1].mxu0 }
 0x124   :  { %v151_v59 = vadd.f32 %v150_v58, %v97_v55  ;;  %v152_v60 = vpop.f32.mrb[2].mxu0 }
 0x125   :  { %v155_v61 = vmax.f32 %v149_v57, 0.0  ;;  %v153_v62 = vpop.f32.mrb[3].mxu0 }
 0x126   :  { %v156_v63 = vmax.f32 %v151_v59, 0.0 }
 0x127   :  { %v157_v1 = vpack.c.bf16 %v155_v61, %v155_v61 }
 0x128   :  { %v158_v0 = vpack.c.bf16 %v156_v63, %v156_v63 }
 0x12a   :  { %395 = vmatprep.mubr.bf16.mxu1 %v158_v0 }
 0x12b   :  { %396 = vmatmul.mubr.bf16.vlgmr.msra.gmra.mrb[0].mxu1 %v157_v1 }
 0x1fe   :  { %v397_v9 = vpop.f32.mrb[0].mxu1 }
 0x1ff   :  { %v398_v10 = vadd.f32 %v397_v9, %v196_v7  ;;  %v399_v11 = vpop.f32.mrb[1].mxu1 }
 0x200   :  { %v400_v12 = vadd.f32 %v399_v11, %v200_v8  ;;  %v401_v13 = vpop.f32.mrb[2].mxu1 }
 0x201   :  { %v404_v14 = vmax.f32 %v398_v10, 0.0  ;;  %v402_v15 = vpop.f32.mrb[3].mxu1 }
 0x202   :  { %v405_v16 = vmax.f32 %v400_v12, 0.0 }
 0x203   :  { %v406_v18 = vpack.c.bf16 %v404_v14, %v404_v14 }
 0x204   :  { %v407_v17 = vpack.c.bf16 %v405_v16, %v405_v16 }
 0x206   :  { %575 = vmatprep.mubr.bf16.mxu0 %v407_v17 }
 0x207   :  { %576 = vmatmul.mubr.bf16.vlgmr.msra.gmra.mrb[4].mxu0 %v406_v18 }
 0x2da   :  { %v684_v19 = vpop.f32.mrb[4].mxu0 }
 0x2db   :  { %v685_v21 = vpop.f32.mrb[5].mxu0 }
 0x2dc   :  { %v686_v22 = vadd.f32 %v685_v21, %v684_v19  ;;  %v687_v23 = vpop.f32.mrb[6].mxu0 }
 0x2dd   :  { %v688_v24 = vpop.f32.mrb[7].mxu0 }
 0x2de   :  { %v578_v25 = vadd.f32 %v686_v22, %v649_v20 }
 0x2e0   :  { %767 = vtanh.f32 %v578_v25 }
 0x2ea   :  { %v768_v27 = vpop.eup %767 }
 0x2eb   :  { %v589_v29 = vmul.f32 %v768_v27, %v666_v26 }
 0x2ed   :  { %v595_v30 = vadd.f32 %v667_v28, %v589_v29 }
 0x2ef   :  { %596 = vst [vmem:[#allocation10] sm:$0xff] %v595_v30 }
 0x2f0   :  { %868 = shalt.err (!%p865_p8)
}
 0x2f1   :  { %s869_s21 = scalar_lea.hbm %s1031_s8, 128 }
 0x2f2   :  { %p870_p9 = scmp.ne.s32.totalorder %s1031_s8, %s869_s21  ;;  %p873_p10 = scmp.lt.u32.totalorder %s869_s21, %s1031_s8 }
 0x2f4   :  { %p875_p11 = pnand %p873_p10, %p870_p9 }
 0x2f6   :  { %878 = shalt.err (!%p875_p11)
}
 0x2f7   :  { %606 = dma.vmem_to_hbm [thread:$0]  %s604_s19, 128, %s1031_s8, [#allocation4]  }
 0x2f8   :  { %885 = dma.done.wait [#allocation4], 128  }
 0x2f9   :  { %886 = vsyncadd [#allocation4], 4294967168 }
 0x2fa   :  { %610 = vsyncpa [#allocation3], 1 }
 0x2fb   :  { %611 = vsyncpa [#allocation6], 1 }
 0x2fc   :  { %612 = vsyncpa [#allocation9], 1 }
 0x2fd   :  { %613 = vsyncpa [#allocation4], 1 }

</bundles_post_ra>
